<compile_context>
chip_gen: v5e
topology: v5e:2x2
jax: 0.10.0
libtpu: 0.0.40
codegen_flags: <defaults>
</compile_context>

<pallas_src>
import jax
import jax.numpy as jnp
from jax.experimental import pallas as pl
from jax.experimental.pallas import tpu as pltpu

# Normalization constants from PredictSemantics.setup_normalization
RGB_MEAN = (0.485, 0.456, 0.406)
RGB_STD = (0.229, 0.224, 0.225)
DEPTH_MEAN = 0.213
DEPTH_STD = 0.285

N_CLASSES = 13        # cfg_rednet['n_classes']
HIDDEN = 32           # hidden width of the synthetic head
MAX_TILE_P = 32768    # pixels per grid step (lane axis), multiple of 128
CHUNK_P = 512         # inner compute chunk (lanes); keeps live vregs well under 64
MIN_GRID_STEPS = 4    # keep >= 4 grid steps so v7x's two TensorCores both get work


def _pick_tile(hw: int, n: int, cap: int = MAX_TILE_P, min_steps: int = MIN_GRID_STEPS) -> int:
    """Largest multiple of 128 dividing hw (<= cap), preferring >= min_steps grid steps."""
    divisors = [c for c in range(128, min(cap, hw) + 1, 128) if hw % c == 0]
    if not divisors:
        return hw  # small / odd spatial sizes: one full-row block (block == full dim is legal)
    balanced = [c for c in divisors if n * (hw // c) >= min_steps]
    return max(balanced) if balanced else max(divisors)


def _pick_chunk(tile: int) -> int:
    for c in (CHUNK_P, 256, 128):
        if tile % c == 0:
            return c
    return tile


def _make_kernel(tile: int, chunk: int):
    n_chunks = tile // chunk

    def kernel(rgb_ref, depth_ref, w1r_ref, w1d_ref, b1_ref, w2_ref, b2_ref,
               out_ref, idx_ref):
        # Tiny weights, loaded once per grid step.
        w1r = w1r_ref[...]                                    # (HIDDEN, 3)      bf16
        w1d = w1d_ref[...]                                    # (HIDDEN, 1)      f32
        b1 = b1_ref[...]                                      # (HIDDEN, 1)      f32
        w2 = w2_ref[...]                                      # (CLASSES, HIDDEN) bf16
        b2 = b2_ref[...]                                      # (CLASSES, 1)     f32
        # Hoisted out of the chunk loop (broadcast_in_dim is not CSE'd inside loops).
        class_ids = jax.lax.broadcasted_iota(jnp.int32, (N_CLASSES, chunk), 0)

        def body(c, carry):
            start = pl.multiple_of(c * chunk, chunk)
            rgb_c = rgb_ref[:, pl.ds(start, chunk)]                        # (3, chunk) bf16
            dep_c = depth_ref[:, pl.ds(start, chunk)].astype(jnp.float32)  # (1, chunk) f32
            # RGB channels: bf16 MXU matmul, f32 accumulation.
            h = jnp.dot(w1r, rgb_c, preferred_element_type=jnp.float32)    # (HIDDEN, chunk)
            # Single depth channel: VPU broadcast multiply-add (K=1 dot wastes an MXU pass).
            h = h + w1d * dep_c + b1
            h = jnp.maximum(h, 0.0)                                        # ReLU in f32
            scores = jnp.dot(w2, h.astype(jnp.bfloat16),
                             preferred_element_type=jnp.float32) + b2      # (CLASSES, chunk)
            # argmax over classes; smallest index wins on ties (== torch.argmax).
            best = jnp.max(scores, axis=0, keepdims=True)
            idx = jnp.min(jnp.where(scores == best, class_ids, N_CLASSES),
                          axis=0, keepdims=True)                           # (1, chunk) i32
            idx_ref[:, pl.ds(start, chunk)] = idx
            return carry

        jax.lax.fori_loop(0, n_chunks, body, 0,
                          unroll=True if n_chunks <= 8 else 8)
        # One wide uint8 store per grid step (uint8 native tile is (32,128); amortize the
        # masked sublane-1 store into a single full-tile write).
        out_ref[...] = idx_ref[...].astype(jnp.uint8)

    return kernel


def _fold_normalization(params):
    """Fold the /255 + per-channel affine normalization into the first-layer weights."""
    w1, b1, w2, b2 = params
    rgb_std = jnp.asarray(RGB_STD, jnp.float32)
    rgb_mean = jnp.asarray(RGB_MEAN, jnp.float32)
    w1_rgb = w1[:, 0:3] * (1.0 / (255.0 * rgb_std))[None, :]        # (HIDDEN, 3)
    w1_dep = w1[:, 3:4] * (1.0 / DEPTH_STD)                         # (HIDDEN, 1)
    b1_eff = (b1
              - w1[:, 0:3] @ (rgb_mean / rgb_std)[:, None]
              - w1[:, 3:4] * (DEPTH_MEAN / DEPTH_STD))              # (HIDDEN, 1)
    return w1_rgb, w1_dep, b1_eff, w2, b2


def predict_semantics(rgb, depth, params):
    """rgb:   (N, 3, Hr, Wr) float32, values in [0, 255]   (NCHW, as in PyTorch)
       depth: (N, 1, H, W)   float32 ('depth_normalized' sensor reading)
       returns semantics: (N, 1, H, W) uint8"""
    n, _, h, w = depth.shape
    hw = h * w

    # F.interpolate(..., mode='bilinear') equivalent (antialias=False matches PyTorch default).
    # Emit bf16 so the XLA->kernel HBM round-trip of the resized RGB is halved.
    # TODO(synk): fully fuse the bilinear resize into the kernel (scalar-prefetched source-row
    #             index/weight tables) to remove the intermediate HBM round-trip entirely.
    rgb_r = jax.image.resize(rgb, (n, 3, h, w), method="bilinear", antialias=False)
    rgb_flat = rgb_r.astype(jnp.bfloat16).reshape(n, 3, hw)       # (N, 3, H*W) bf16
    depth_flat = depth.astype(jnp.bfloat16).reshape(n, 1, hw)     # (N, 1, H*W) bf16

    w1_rgb, w1_dep, b1_eff, w2, b2 = _fold_normalization(params)
    w1_rgb = w1_rgb.astype(jnp.bfloat16)   # MXU operands in bf16
    w2 = w2.astype(jnp.bfloat16)
    # w1_dep / b1_eff / b2 stay f32 (used on the VPU).

    tile = _pick_tile(hw, n)
    chunk = _pick_chunk(tile)
    grid = (n, hw // tile)

    out = pl.pallas_call(
        _make_kernel(tile, chunk),
        out_shape=jax.ShapeDtypeStruct((n, 1, hw), jnp.uint8),
        grid_spec=pltpu.PrefetchScalarGridSpec(
            num_scalar_prefetch=0,
            grid=grid,
            in_specs=[
                pl.BlockSpec((pl.Squeezed(), 3, tile), lambda b, i: (b, 0, i)),
                pl.BlockSpec((pl.Squeezed(), 1, tile), lambda b, i: (b, 0, i)),
                pl.BlockSpec((HIDDEN, 3), lambda b, i: (0, 0)),
                pl.BlockSpec((HIDDEN, 1), lambda b, i: (0, 0)),
                pl.BlockSpec((HIDDEN, 1), lambda b, i: (0, 0)),
                pl.BlockSpec((N_CLASSES, HIDDEN), lambda b, i: (0, 0)),
                pl.BlockSpec((N_CLASSES, 1), lambda b, i: (0, 0)),
            ],
            out_specs=pl.BlockSpec((pl.Squeezed(), 1, tile), lambda b, i: (b, 0, i)),
            scratch_shapes=[pltpu.VMEM((1, tile), jnp.int32)],
        ),
        compiler_params=pltpu.CompilerParams(
            dimension_semantics=("parallel", "parallel")),
    )(rgb_flat, depth_flat, w1_rgb, w1_dep, b1_eff, w2, b2)

    return out.reshape(n, 1, h, w)           # already uint8


def init_params(key):
    k1, k2 = jax.random.split(key)
    w1 = jax.random.normal(k1, (HIDDEN, 4), jnp.float32) * 0.5
    b1 = jnp.zeros((HIDDEN, 1), jnp.float32)
    w2 = jax.random.normal(k2, (N_CLASSES, HIDDEN), jnp.float32) * 0.5
    b2 = jnp.zeros((N_CLASSES, 1), jnp.float32)
    return w1, b1, w2, b2


def _reference_fp32(rgb, depth, params):
    """Pure-JAX f32 reference with the un-folded normalization (matches the PyTorch math)."""
    w1, b1, w2, b2 = params
    n, _, h, w = depth.shape
    rgb_r = jax.image.resize(rgb, (n, 3, h, w), method="bilinear", antialias=False)
    mean = jnp.asarray(RGB_MEAN, jnp.float32).reshape(1, 3, 1, 1)
    std = jnp.asarray(RGB_STD, jnp.float32).reshape(1, 3, 1, 1)
    rgb_n = (rgb_r / 255.0 - mean) / std
    depth_n = (depth - DEPTH_MEAN) / DEPTH_STD
    x = jnp.concatenate([rgb_n, depth_n], axis=1).reshape(n, 4, h * w)     # (N, 4, HW)
    hid = jnp.maximum(jnp.einsum("oc,ncp->nop", w1, x) + b1[None], 0.0)
    scores = jnp.einsum("oc,ncp->nop", w2, hid) + b2[None]
    return jnp.argmax(scores, axis=1).astype(jnp.uint8).reshape(n, 1, h, w)


def _reference_kernel_numerics(rgb, depth, params):
    """Reference mirroring the kernel's folded-normalization / bf16-matmul numerics."""
    w1_rgb, w1_dep, b1_eff, w2, b2 = _fold_normalization(params)
    n, _, h, w = depth.shape
    rgb_r = jax.image.resize(rgb, (n, 3, h, w), method="bilinear", antialias=False)
    rgb_b = rgb_r.astype(jnp.bfloat16).reshape(n, 3, h * w)
    dep = depth.astype(jnp.bfloat16).astype(jnp.float32).reshape(n, 1, h * w)
    hid = jnp.einsum("oc,ncp->nop", w1_rgb.astype(jnp.bfloat16), rgb_b,
                     preferred_element_type=jnp.float32)
    hid = hid + w1_dep[None] * dep + b1_eff[None]
    hid = jnp.maximum(hid, 0.0)
    scores = jnp.einsum("oc,ncp->nop", w2.astype(jnp.bfloat16), hid.astype(jnp.bfloat16),
                        preferred_element_type=jnp.float32) + b2[None]
    return jnp.argmax(scores, axis=1).astype(jnp.uint8).reshape(n, 1, h, w)


if __name__ == "__main__":
    key = jax.random.PRNGKey(0)
    k_rgb, k_depth, k_params = jax.random.split(key, 3)

    N, H, W = 2, 16, 16
    # rgb sensor at a larger resolution, interpolated down to the depth resolution
    rgb = jax.random.uniform(k_rgb, (N, 3, 32, 32), jnp.float32, 0.0, 255.0)
    depth = jax.random.uniform(k_depth, (N, 1, H, W), jnp.float32, 0.0, 1.0)

    params = init_params(k_params)

    semantics = jax.block_until_ready(predict_semantics(rgb, depth, params))

    assert semantics.shape == (N, 1, H, W)
    assert semantics.dtype == jnp.uint8
    assert int(semantics.max()) < N_CLASSES

    # Tight check: identical folded / bf16 math as the kernel.
    ref_tight = jax.block_until_ready(_reference_kernel_numerics(rgb, depth, params))
    tight = float(jnp.mean(semantics == ref_tight))
    assert tight > 0.99, f"kernel argmax disagrees with bit-matched reference ({tight})"

    # Loose check: full-precision PyTorch math (bf16 inputs may flip rare near-ties).
    ref_f32 = jax.block_until_ready(_reference_fp32(rgb, depth, params))
    loose = float(jnp.mean(semantics == ref_f32))
    assert loose > 0.95, f"kernel argmax disagrees with f32 reference ({loose})"

    print("KERNEL_OK")
</pallas_src>

<mosaic_0001>
module attributes {stable_mosaic.version = 11 : i64} {
  func.func @kernel(%arg0: i32, %arg1: i32, %arg2: memref<1x3x128xbf16, #tpu.memory_space<vmem>>, %arg3: memref<1x1x128xbf16, #tpu.memory_space<vmem>>, %arg4: memref<32x3xbf16, #tpu.memory_space<vmem>>, %arg5: memref<32x1xf32, #tpu.memory_space<vmem>>, %arg6: memref<32x1xf32, #tpu.memory_space<vmem>>, %arg7: memref<13x32xbf16, #tpu.memory_space<vmem>>, %arg8: memref<13x1xf32, #tpu.memory_space<vmem>>, %arg9: memref<1x1x128xi8, #tpu.memory_space<vmem>>, %arg10: memref<1x128xi32, #tpu.memory_space<vmem>>) attributes {dimension_semantics = [#tpu.dimension_semantics<parallel>, #tpu.dimension_semantics<parallel>], iteration_bounds = array<i64: 2, 2>, scalar_prefetch = 0 : i64, scratch_operands = 1 : i64, tpu.core_type = #tpu.core_type<tc>, window_params = [{transform_indices = @transform_0, window_bounds = array<i64: 1, 3, 128>}, {transform_indices = @transform_1, window_bounds = array<i64: 1, 1, 128>}, {pipeline_mode = #tpu.pipeline_mode<synchronous>, transform_indices = @transform_2, window_bounds = array<i64: 32, 3>}, {pipeline_mode = #tpu.pipeline_mode<synchronous>, transform_indices = @transform_3, window_bounds = array<i64: 32, 1>}, {pipeline_mode = #tpu.pipeline_mode<synchronous>, transform_indices = @transform_4, window_bounds = array<i64: 32, 1>}, {pipeline_mode = #tpu.pipeline_mode<synchronous>, transform_indices = @transform_5, window_bounds = array<i64: 13, 32>}, {pipeline_mode = #tpu.pipeline_mode<synchronous>, transform_indices = @transform_6, window_bounds = array<i64: 13, 1>}, {transform_indices = @transform_7, window_bounds = array<i64: 1, 1, 128>}]} {
    %c0 = arith.constant 0 : index
    %c0_0 = arith.constant 0 : index
    %0 = vector.load %arg4[%c0, %c0_0] : memref<32x3xbf16, #tpu.memory_space<vmem>>, vector<32x3xbf16>
    %c0_1 = arith.constant 0 : index
    %c0_2 = arith.constant 0 : index
    %1 = vector.load %arg5[%c0_1, %c0_2] : memref<32x1xf32, #tpu.memory_space<vmem>>, vector<32x1xf32>
    %c0_3 = arith.constant 0 : index
    %c0_4 = arith.constant 0 : index
    %2 = vector.load %arg6[%c0_3, %c0_4] : memref<32x1xf32, #tpu.memory_space<vmem>>, vector<32x1xf32>
    %c0_5 = arith.constant 0 : index
    %c0_6 = arith.constant 0 : index
    %3 = vector.load %arg7[%c0_5, %c0_6] : memref<13x32xbf16, #tpu.memory_space<vmem>>, vector<13x32xbf16>
    %c0_7 = arith.constant 0 : index
    %c0_8 = arith.constant 0 : index
    %4 = vector.load %arg8[%c0_7, %c0_8] : memref<13x1xf32, #tpu.memory_space<vmem>>, vector<13x1xf32>
    %5 = tpu.iota {dimensions = array<i32: 0>} : vector<13x128xi32>
    %c0_i32 = arith.constant 0 : i32
    %c128_i32 = arith.constant 128 : i32
    %6 = arith.muli %c0_i32, %c128_i32 : i32
    %7 = tpu.assume_multiple %6, 128 : i32
    %c0_9 = arith.constant 0 : index
    %c0_10 = arith.constant 0 : index
    %8 = arith.index_cast %7 : i32 to index
    %9 = vector.load %arg2[%c0_9, %c0_10, %8] : memref<1x3x128xbf16, #tpu.memory_space<vmem>>, vector<1x3x128xbf16>
    %10 = vector.shape_cast %9 : vector<1x3x128xbf16> to vector<3x128xbf16>
    %c0_11 = arith.constant 0 : index
    %c0_12 = arith.constant 0 : index
    %11 = arith.index_cast %7 : i32 to index
    %12 = vector.load %arg3[%c0_11, %c0_12, %11] : memref<1x1x128xbf16, #tpu.memory_space<vmem>>, vector<1x1x128xbf16>
    %13 = vector.shape_cast %12 : vector<1x1x128xbf16> to vector<1x128xbf16>
    %14 = arith.extf %13 : vector<1x128xbf16> to vector<1x128xf32>
    %cst = arith.constant dense<0.000000e+00> : vector<32x128xf32>
    %15 = tpu.matmul %0, %10, %cst {dimension_numbers = #tpu.dot_dimension_numbers<[1], [0], [0], [1], [0, 0, 1, 1], [], []>} : vector<32x3xbf16>, vector<3x128xbf16>, vector<32x128xf32> -> vector<32x128xf32>
    %16 = vector.broadcast %1 : vector<32x1xf32> to vector<32x128xf32>
    %17 = vector.broadcast %14 : vector<1x128xf32> to vector<32x128xf32>
    %18 = arith.mulf %16, %17 : vector<32x128xf32>
    %19 = arith.addf %15, %18 : vector<32x128xf32>
    %20 = vector.broadcast %2 : vector<32x1xf32> to vector<32x128xf32>
    %21 = arith.addf %19, %20 : vector<32x128xf32>
    %cst_13 = arith.constant 0.000000e+00 : f32
    %22 = vector.broadcast %cst_13 : f32 to vector<32x128xf32>
    %23 = arith.maximumf %21, %22 : vector<32x128xf32>
    %24 = arith.truncf %23 : vector<32x128xf32> to vector<32x128xbf16>
    %cst_14 = arith.constant dense<0.000000e+00> : vector<13x128xf32>
    %25 = tpu.matmul %3, %24, %cst_14 {dimension_numbers = #tpu.dot_dimension_numbers<[1], [0], [0], [1], [0, 0, 1, 1], [], []>} : vector<13x32xbf16>, vector<32x128xbf16>, vector<13x128xf32> -> vector<13x128xf32>
    %26 = vector.broadcast %4 : vector<13x1xf32> to vector<13x128xf32>
    %27 = arith.addf %25, %26 : vector<13x128xf32>
    %cst_15 = arith.constant dense<0xFF800000> : vector<128xf32>
    %28 = vector.multi_reduction <maximumf>, %27, %cst_15 [0] : vector<13x128xf32> to vector<128xf32>
    %29 = vector.shape_cast %28 : vector<128xf32> to vector<1x128xf32>
    %30 = vector.broadcast %29 : vector<1x128xf32> to vector<13x128xf32>
    %31 = arith.cmpf oeq, %27, %30 : vector<13x128xf32>
    %c13_i32 = arith.constant 13 : i32
    %32 = vector.broadcast %c13_i32 : i32 to vector<13x128xi32>
    %33 = arith.select %31, %5, %32 : vector<13x128xi1>, vector<13x128xi32>
    %cst_16 = arith.constant dense<2147483647> : vector<128xi32>
    %34 = vector.multi_reduction <minsi>, %33, %cst_16 [0] : vector<13x128xi32> to vector<128xi32>
    %35 = vector.shape_cast %34 : vector<128xi32> to vector<1x128xi32>
    %c0_17 = arith.constant 0 : index
    %36 = arith.index_cast %7 : i32 to index
    %37 = vector.load %arg10[%c0_17, %36] : memref<1x128xi32, #tpu.memory_space<vmem>>, vector<1x128xi32>
    tpu.vector_store %arg10[%c0_17, %36], %35 {strides = array<i32>} : memref<1x128xi32, #tpu.memory_space<vmem>>, vector<1x128xi32>,
    %c1_i32 = arith.constant 1 : i32
    %c0_18 = arith.constant 0 : index
    %c0_19 = arith.constant 0 : index
    %38 = vector.load %arg10[%c0_18, %c0_19] : memref<1x128xi32, #tpu.memory_space<vmem>>, vector<1x128xi32>
    %39 = arith.trunci %38 : vector<1x128xi32> to vector<1x128xi8>
    %c0_20 = arith.constant 0 : index
    %c0_21 = arith.constant 0 : index
    %c0_22 = arith.constant 0 : index
    %40 = vector.load %arg9[%c0_20, %c0_21, %c0_22] : memref<1x1x128xi8, #tpu.memory_space<vmem>>, vector<1x1x128xi8>
    %41 = vector.shape_cast %40 : vector<1x1x128xi8> to vector<1x128xi8>
    %42 = vector.shape_cast %39 : vector<1x128xi8> to vector<1x1x128xi8>
    tpu.vector_store %arg9[%c0_20, %c0_21, %c0_22], %42 {strides = array<i32>} : memref<1x1x128xi8, #tpu.memory_space<vmem>>, vector<1x1x128xi8>,
    return
  }
  func.func @transform_0(%arg0: i32, %arg1: i32) -> (i32, i32, i32) {
    %c0_i32 = arith.constant 0 : i32
    %c0_i32_0 = arith.constant 0 : i32
    return %arg0, %c0_i32, %arg1 : i32, i32, i32
  }
  func.func @transform_1(%arg0: i32, %arg1: i32) -> (i32, i32, i32) {
    %c0_i32 = arith.constant 0 : i32
    %c0_i32_0 = arith.constant 0 : i32
    return %arg0, %c0_i32, %arg1 : i32, i32, i32
  }
  func.func @transform_2(%arg0: i32, %arg1: i32) -> (i32, i32) {
    %c0_i32 = arith.constant 0 : i32
    %c0_i32_0 = arith.constant 0 : i32
    %c0_i32_1 = arith.constant 0 : i32
    return %c0_i32, %c0_i32_0 : i32, i32
  }
  func.func @transform_3(%arg0: i32, %arg1: i32) -> (i32, i32) {
    %c0_i32 = arith.constant 0 : i32
    %c0_i32_0 = arith.constant 0 : i32
    %c0_i32_1 = arith.constant 0 : i32
    return %c0_i32, %c0_i32_0 : i32, i32
  }
  func.func @transform_4(%arg0: i32, %arg1: i32) -> (i32, i32) {
    %c0_i32 = arith.constant 0 : i32
    %c0_i32_0 = arith.constant 0 : i32
    %c0_i32_1 = arith.constant 0 : i32
    return %c0_i32, %c0_i32_0 : i32, i32
  }
  func.func @transform_5(%arg0: i32, %arg1: i32) -> (i32, i32) {
    %c0_i32 = arith.constant 0 : i32
    %c0_i32_0 = arith.constant 0 : i32
    %c0_i32_1 = arith.constant 0 : i32
    return %c0_i32, %c0_i32_0 : i32, i32
  }
  func.func @transform_6(%arg0: i32, %arg1: i32) -> (i32, i32) {
    %c0_i32 = arith.constant 0 : i32
    %c0_i32_0 = arith.constant 0 : i32
    %c0_i32_1 = arith.constant 0 : i32
    return %c0_i32, %c0_i32_0 : i32, i32
  }
  func.func @transform_7(%arg0: i32, %arg1: i32) -> (i32, i32, i32) {
    %c0_i32 = arith.constant 0 : i32
    %c0_i32_0 = arith.constant 0 : i32
    return %arg0, %c0_i32, %arg1 : i32, i32, i32
  }
}

</mosaic_0001>

<bundles_post_ra>
// kernel: tpu_custom_call.1
= control target key start
LH: loop header
LB: loop body
LE: loop exit
PB: predicated region body
PF: predicated region fallthrough
CT: control target
= control target key end

     0   :  { %s777_s24 = smov 0   ;;  %s779_s25 = smov 0   ;;  %s882_s0 = inlined_call_operand.vmem [shape: bf16[2,3,256], index: 0, kind: input, shape index: {}]   ;;  %s883_s1 = inlined_call_operand.vmem [shape: bf16[2,1,256], index: 1, kind: input, shape index: {}]   ;;  %s884_s2 = inlined_call_operand.vmem [shape: bf16[32,3], index: 2, kind: input, shape index: {}]   ;;  %s885_s3 = inlined_call_operand.vmem [shape: f32[32,1], index: 3, kind: input, shape index: {}]   ;;  %s886_s4 = inlined_call_operand.vmem [shape: f32[32,1], index: 4, kind: input, shape index: {}]   ;;  %s887_s5 = inlined_call_operand.vmem [shape: bf16[13,32], index: 5, kind: input, shape index: {}]   ;;  %s888_s6 = inlined_call_operand.vmem [shape: f32[13,1], index: 6, kind: input, shape index: {}]   ;;  %s889_s7 = inlined_call_operand.vmem [shape: u8[2,1,256], index: 7, kind: output, shape index: {}]  }
   0x1   :  { %s781_s26 = smov 0   ;;  %s783_s27 = smov 0  }
   0x2   :  { %s785_s28 = smov 0  }
   0x3 LB: > { %s26_s29 = sadd.s32 1, %s725_s26  ;;  %s29_s30 = sadd.s32 1, %s729_s27  ;;  %s733_s28 = sphi %s785_s28, %s17_s28   ;;  %s729_s27 = sphi %s783_s27, %s893_s27   ;;  %s725_s26 = sphi %s781_s26, %s892_s26   ;;  %s721_s25 = sphi %s779_s25, %s891_s25   ;;  %s717_s24 = sphi %s777_s24, %s890_s24  }
   0x4   : > { %p27_p0 = scmp.ge.s32.totalorder %s26_s29, 2  ;;  %p624_p1 = scmp.ge.s32.totalorder %s733_s28, 1 }
   0x5   : > { %p270_p2 = scmp.lt.s32.totalorder %s733_s28, 5 }
   0x6   : > { %s895_s29 = smov (%p27_p0, %s26_s29), 0  ;;  %s897_s30 = smov (!%p27_p0, %s29_s30), %s729_s27 }
   0x7   : > { %p271_p3 = pnand %p624_p1, %p270_p2  ;;  %p31_p4 = scmp.ge.s32.totalorder %s897_s30, 2 }
   0x8   : > { %p314_p5 = scmp.lt.s32.totalorder (!%p271_p3), %s721_s25, 1  ;;  %p316_p6 = scmp.lt.s32.totalorder (!%p271_p3), %s717_s24, 1 }
   0x9   : > { %s899_s30 = smov (%p31_p4, %s897_s30), 0  ;;  %274 = sbr.rel (%p271_p3) target bundleno = 362 (0x16a), region = 48 }
   0xe   : > { %v343_v0 = vld [vmem:[%s885_s3 + $0x10] sm:$0xff]  ;;  %vm401_vm0 = vcmask 1040384   ;;  %v735_v1 = vmov 0   ;;  %v341_v2 = vld [vmem:[%s885_s3] sm:$0xff]  ;;  %s901_s25 = smov (!%p314_p5, %s721_s25), 1  ;;  %s903_s24 = smov (!%p316_p6, %s717_s24), 1  ;;  %v353_v63 = vlaneseq }
   0xf   : > { %692 = vset.pattern.permute.xlu0 %v735_v1  ;;  %693 = vset.pattern.permute.xlu1 %v735_v1  ;;  %vm402_vm1 = vcmask 1041408   ;;  %v736_v3 = vmov 65535   ;;  %s625_s12 = sshll.u32 %s901_s25, 1  ;;  %v347_v5 = vld [vmem:[%s886_s4 + $0x10] sm:$0xff]  ;;  %v344_v7 = vld [vmem:[%s885_s3 + $0x18] sm:$0xff]  ;;  %v342_v8 = vld [vmem:[%s885_s3 + $0x8] sm:$0xff] }
  0x10   : > { %371 = vperm.xlu0 %692, %v343_v0   ;;  %361 = vperm.xlu1 %693, %v341_v2   ;;  %v403_v4 = vsel %vm401_vm0, 4294967295, %v736_v3  ;;  %s817_s15 = sadd.s32 %s625_s12, %s903_s24  ;;  %v646_v11 = vld [vmem:[%s884_s2] sm:$0xff]  ;;  %v647_v12 = vld [vmem:[%s884_s2 + $0x8] sm:$0xff]  ;;  %v348_v13 = vld [vmem:[%s886_s4 + $0x18] sm:$0xff]  ;;  %vm394_vm2 = vcmask 23552   ;;  %vm472_vm3 = vcmask 261120  }
  0x11   : > { %694 = vset.pattern.permute.xlu2 %v735_v1  ;;  %s626_s16 = sshll.u32 %s817_s15, 1  ;;  %v404_v6 = vsel %vm402_vm1, %v403_v4, 0  ;;  %v345_v14 = vld [vmem:[%s886_s4] sm:$0xff]  ;;  %v346_v15 = vld [vmem:[%s886_s4 + $0x8] sm:$0xff]  ;;  %s328_s23 = scalar_lea.vmem %s883_s1, %s817_s15  ;;  %vm490_vm4 = vcmask 1044480   ;;  %v354_v2 = vshrl.u32 %v353_v63, 7 }
  0x12   : > { %439 = vperm.xlu2 %694, %v347_v5   ;;  %s321_s19 = scalar_lea.vmem %s882_s0, %s626_s16  ;;  %v352_v16 = vld [vmem:[%s888_s6 + $0x8] sm:$0x1f]  ;;  %v351_v17 = vld [vmem:[%s888_s6] sm:$0xff]  ;;  %s335_s12 = scalar_lea.vmem %s889_s7, %s817_s15  ;;  %vm520_vm11 = vsmask.f32 0 }
  0x13   : > { %v356_v9 = vld [vmem:[%s321_s19] sm:$0x3]  ;;  %v648_v51 = vld [vmem:[%s887_s5] sm:$0x70]  ;;  %v355_v5 = vadd.s32 8, %v354_v2  ;;  %vm521_vm12 = vmand %vm401_vm0, %vm520_vm11 }
  0x14   : > { %v406_v10 = vand.u32 %v404_v6, %v356_v9  ;;  %v357_v19 = vld [vmem:[%s328_s23] sm:$0x1] }
  0x15   : > { %v358_v22 = vunpack.c.l.bf16 %v357_v19  ;;  %v641_v50 = vld [vmem:[%s887_s5] sm:$0xf] }
  0x16   : > { %415 = vmatpush.bf16.msra.mxu0 %v406_v10  ;;  %649 = vmatpush.bf16.msra.mxu2 %v406_v10  ;;  %v642_v53 = vor.u32 %v648_v51, %v641_v50  ;;  %v522_v19 = vld [vmem:[%s335_s12] sm:$0x1] }
  0x17   : > { %v379_v23 = vperm.slane %v358_v22, 0 }
  0x18   : > { %376 = vperm.xlu0 %692, %v344_v7   ;;  %366 = vperm.xlu1 %693, %v342_v8  }
  0x19   : > { %637 = vmatmul.msk.bf16.vlgmr.msra.gmra.mxu0 %vm394_vm2, %v646_v11  ;;  %638 = vmatmul.msk.bf16.vlgmr.msra.gmra.mxu2 %vm394_vm2, %v647_v12 }
  0x1a   : > { %444 = vperm.xlu2 %694, %v348_v13  }
  0x20   : > { %429 = vperm.xlu0 %692, %v345_v14   ;;  %434 = vperm.xlu1 %693, %v346_v15  }
  0x22   : > { %464 = vperm.xlu2 %694, %v352_v16  }
  0x28   : > { %459 = vperm.xlu0 %692, %v351_v17  }
  0x6c   : > { %v440_v24 = vpop.permute.xlu2 %439 }
  0x74   : > { %v445_v39 = vpop.permute.xlu2 %444 }
  0x7c   : > { %v465_v55 = vpop.permute.xlu2 %464 }
  0x82   : > { %v362_v18 = vpop.permute.xlu1 %361  ;;  %v372_v20 = vpop.permute.xlu0 %371 }
  0x83   : > { %v382_v27 = vmul.f32 %v379_v23, %v372_v20  ;;  %v380_v30 = vmul.f32 %v379_v23, %v362_v18 }
  0x8a   : > { %v367_v25 = vpop.permute.xlu1 %366  ;;  %v377_v28 = vpop.permute.xlu0 %376 }
  0x8b   : > { %v381_v31 = vmul.f32 %v379_v23, %v367_v25  ;;  %v383_v33 = vmul.f32 %v379_v23, %v377_v28 }
  0x92   : > { %v435_v40 = vpop.permute.xlu1 %434  ;;  %v430_v43 = vpop.permute.xlu0 %429 }
  0x96   : > { %v417_v21 = vpop.f32.mrf.mxu0 }
  0x97   : > { %v418_v36 = vadd.f32 %v417_v21, %v380_v30 }
  0x99   : > { %v447_v44 = vadd.f32 %v430_v43, %v418_v36 }
  0x9a   : > { %v460_v57 = vpop.permute.xlu0 %459 }
  0x9b   : > { %v451_v49 = vmax.f32 %v447_v44, 0.0 }
  0x9c   : > { %v422_v26 = vpop.f32.mrf.mxu2 }
  0x9d   : > { %v423_v32 = vadd.f32 %v422_v26, %v382_v27 }
  0x9e   : > { %v419_v29 = vpop.f32.mrf.mxu0 }
  0x9f   : > { %v420_v34 = vadd.f32 %v419_v29, %v381_v31  ;;  %v449_v38 = vadd.f32 %v440_v24, %v423_v32 }
  0xa1   : > { %v448_v41 = vadd.f32 %v435_v40, %v420_v34  ;;  %v453_v45 = vmax.f32 %v449_v38, 0.0 }
  0xa3   : > { %v452_v47 = vmax.f32 %v448_v41, 0.0 }
  0xa4   : > { %v424_v35 = vpop.f32.mrf.mxu2 }
  0xa5   : > { %v425_v37 = vadd.f32 %v424_v35, %v383_v33  ;;  %v455_v52 = vpack.c.bf16 %v452_v47, %v451_v49 }
  0xa7   : > { %v450_v42 = vadd.f32 %v445_v39, %v425_v37 }
  0xa9   : > { %v454_v46 = vmax.f32 %v450_v42, 0.0 }
  0xab   : > { %v456_v48 = vpack.c.bf16 %v454_v46, %v453_v45 }
  0xad   : > { %482 = vmatpush.bf16.msra.mxu1 %v456_v48 }
  0xb1   : > { %483 = vmatpush.bf16.msra.mxu1 %v455_v52 }
  0xb4   : > { %643 = vmatmul.msk.bf16.vlgmr.msra.gmra.mxu1 %vm472_vm3, %v642_v53 }
 0x131   : > { %v485_v54 = vpop.f32.mrf.mxu1 }
 0x132   : > { %v486_v59 = vadd.f32 %v485_v54, %v460_v57 }
 0x139   : > { %v487_v56 = vpop.f32.mrf.mxu1 }
 0x13a   : > { %v488_v58 = vadd.f32 %v487_v56, %v465_v55 }
 0x13c   : > { %v491_v60 = vsel %vm490_vm4, %v488_v58, -inf }
 0x13d   : > { %v492_v61 = vmax.f32 %v486_v59, %v491_v60 }
 0x13f   : > { %v493_v62 = vrot.slane %v492_v61, 4 }
 0x141   : > { %v494_v0 = vmax.f32 %v492_v61, %v493_v62 }
 0x143   : > { %v495_v1 = vrot.slane %v494_v0, 2 }
 0x145   : > { %v496_v3 = vmax.f32 %v494_v0, %v495_v1 }
 0x147   : > { %v497_v4 = vrot.slane %v496_v3, 1 }
 0x149   : > { %v498_v6 = vmax.f32 %v496_v3, %v497_v4 }
 0x14b   : > { %vm499_vm5 = vcmp.eq.f32.partialorder %v486_v59, %v498_v6  ;;  %vm500_vm6 = vcmp.eq.f32.partialorder %v488_v58, %v498_v6 }
 0x14c   : > { %v501_v7 = vsel %vm499_vm5, %v354_v2, 13  ;;  %v502_v8 = vsel %vm500_vm6, %v355_v5, 13 }
 0x14d   : > { %v503_v9 = vsel %vm490_vm4, %v502_v8, 2147483647 }
 0x14e   : > { %vm504_vm7 = vcmp.lt.s32.totalorder %v501_v7, %v503_v9 }
 0x14f   : > { %v505_v10 = vsel %vm504_vm7, %v501_v7, %v503_v9 }
 0x150   : > { %v506_v11 = vrot.slane %v505_v10, 4 }
 0x152   : > { %vm507_vm8 = vcmp.lt.s32.totalorder %v505_v10, %v506_v11 }
 0x153   : > { %v508_v12 = vsel %vm507_vm8, %v505_v10, %v506_v11 }
 0x154   : > { %v509_v13 = vrot.slane %v508_v12, 2 }
 0x156   : > { %vm510_vm9 = vcmp.lt.s32.totalorder %v508_v12, %v509_v13 }
 0x157   : > { %v511_v14 = vsel %vm510_vm9, %v508_v12, %v509_v13 }
 0x158   : > { %v512_v15 = vrot.slane %v511_v14, 1 }
 0x15a   : > { %vm513_vm10 = vcmp.lt.s32.totalorder %v511_v14, %v512_v15 }
 0x15b   : > { %v514_v16 = vsel %vm513_vm10, %v511_v14, %v512_v15 }
 0x15c   : > { %515 = vst [vmem:[#allocation2] sm:$0x1] %v514_v16 }
 0x163   : > { %v516_v17 = vld [vmem:[#allocation2] sm:$0x1] }
 0x164   : > { %v517_v18 = vpack.c.b16 %v516_v17, %v516_v17 }
 0x166   : > { %v518_v20 = vpack.c.b8 %v517_v18, %v517_v18 }
 0x168   : > { %v523_v21 = vsel %vm521_vm12, %v518_v20, %v522_v19 }
 0x169   : > { %524 = vst [vmem:[%s335_s12] sm:$0x1] %v523_v21 }
 0x16a PF: > { %s17_s28 = sadd.s32 1, %s733_s28   ;;  %s890_s24 = smov %s725_s26 }
 0x16b   : > { %p14_p7 = scmp.ge.s32.totalorder %s17_s28, 6   ;;  %s891_s25 = smov %s729_s27 }
 0x16c   : > { %s892_s26 = smov %s895_s29  ;;  %s893_s27 = smov %s899_s30 }
 0x16d   :  { %16 = sbr.rel (!%p14_p7) target bundleno = 3 (0x3), region = 81 }

</bundles_post_ra>
